<compile_context>
chip_gen: v7x
topology: tpu7x:2x2x1
jax: 0.10.0
libtpu: 0.0.40
codegen_flags: <defaults>
</compile_context>

<pallas_src>
import functools

import jax
import jax.numpy as jnp
from jax.experimental import pallas as pl
from jax.experimental.pallas import tpu as pltpu

# ---- module hyper-params (from ExampleModel.__init__) ----
IN_CHANNELS = 3
OUT_CHANNELS = 16
KERNEL_SIZE = 3
M = 2
N_DIM = OUT_CHANNELS * M * M                          # 64 Linear output features
K_DIM = IN_CHANNELS * KERNEL_SIZE * KERNEL_SIZE       # 27

_MAX_TILE_PIXELS = 1024                               # <= 256 KB f32 out per step


def _round_up(a, b):
    return ((a + b - 1) // b) * b


def _fused_conv_kernel(x_ref, w_ref, b_ref, m_ref, o_ref, *, width, tl):
    """One (batch, pixel-tile) grid step.

    x_ref: (1, 1, 3, TL_IN)  overlapping window of H-padded flat input
    w_ref: (9, 64, 3)        per-tap weights, w_ref[kh*3+kw][n, c]
    b_ref: (64, 1)           bias, broadcast over pixel lanes
    m_ref: (2, TL)           width-boundary masks for the kw=0 / kw=2 taps
    o_ref: (1, 64, TL)       channel-major output tile (lane-dense store)
    """
    xin = x_ref[0, 0, :, :]                     # (3, TL_IN) f32
    m_left = m_ref[0:1, :]                      # (1, TL)
    m_right = m_ref[1:2, :]                     # (1, TL)

    acc = None
    for kh in range(KERNEL_SIZE):
        for kw in range(KERNEL_SIZE):
            s = kh * width + kw                 # static lane shift per tap
            slab = xin[:, s:s + tl]             # (3, TL)
            if kw == 0:
                slab = slab * m_left            # zero wrapped-around column
            elif kw == 2:
                slab = slab * m_right
            d = jnp.dot(w_ref[kh * KERNEL_SIZE + kw], slab,
                        preferred_element_type=jnp.float32)   # (64, TL)
            acc = d if acc is None else acc + d

    out = jnp.maximum(acc + b_ref[...], 0.0)    # bias + ReLU in f32
    o_ref[0] = out.astype(o_ref.dtype)


@jax.jit
def example_model_forward(x, weight, bias):
    """x: (B, 3, H, W) f32; weight: (64, 27) torch Linear layout; bias: (64,).
    Returns (B, 16, 2H, 2W) f32, identical to relu(MultiOutputConv2d(x))."""
    B, C, H, W = x.shape
    assert C == IN_CHANNELS
    L = H * W

    # ---- tiling over the flattened pixel axis ----
    tl = min(_MAX_TILE_PIXELS, _round_up(L, 128))     # pixels (lanes) per step
    n_tiles = -(-L // tl)
    l_pad = n_tiles * tl
    halo = _round_up(2 * W + 2, 128)                  # covers all 9 tap shifts
    tl_in = tl + halo
    q = l_pad + halo                                  # flat input length

    # H-padded, flattened input with a 1-element left offset: the tap (kh, kw)
    # of output pixel p = h*W + w sits at flat index p + kh*W + kw.
    xh = jnp.pad(x, ((0, 0), (0, 0), (1, 1), (0, 0)))          # (B, C, H+2, W)
    xflat = xh.reshape(B, C, (H + 2) * W)
    xf = jnp.pad(xflat, ((0, 0), (0, 0), (1, q - 1 - (H + 2) * W)))

    # Overlapping per-tile windows (~14 B/pixel vs 108 B/pixel full im2col).
    idx = (jnp.arange(n_tiles, dtype=jnp.int32)[:, None] * tl
           + jnp.arange(tl_in, dtype=jnp.int32)[None, :])       # (T, TL_IN)
    windows = jnp.take(xf, idx, axis=2)                         # (B, C, T, TL_IN)
    windows = windows.transpose(0, 2, 1, 3)                     # (B, T, C, TL_IN)

    # Per-tap weight slabs: w_stack[kh*3+kw, n, c] = weight[n, c*9 + kh*3 + kw]
    w_stack = jnp.transpose(
        weight.reshape(N_DIM, C, KERNEL_SIZE * KERNEL_SIZE),
        (2, 0, 1)).astype(jnp.float32)                          # (9, 64, 3)
    b_col = bias.reshape(N_DIM, 1).astype(jnp.float32)

    # Width-boundary masks: kw=0 tap invalid at w==0, kw=2 tap at w==W-1.
    wcol = jnp.arange(l_pad, dtype=jnp.int32) % W
    masks = jnp.stack([wcol != 0, wcol != W - 1], axis=0).astype(jnp.float32)

    kernel = functools.partial(_fused_conv_kernel, width=W, tl=tl)
    out_cm = pl.pallas_call(
        kernel,
        out_shape=jax.ShapeDtypeStruct((B, N_DIM, l_pad), jnp.float32),
        grid=(B, n_tiles),
        in_specs=[
            pl.BlockSpec((1, 1, C, tl_in), lambda b, t: (b, t, 0, 0)),
            pl.BlockSpec((KERNEL_SIZE * KERNEL_SIZE, N_DIM, C),
                         lambda b, t: (0, 0, 0)),
            pl.BlockSpec((N_DIM, 1), lambda b, t: (0, 0)),
            pl.BlockSpec((2, tl), lambda b, t: (0, t)),
        ],
        out_specs=pl.BlockSpec((1, N_DIM, tl), lambda b, t: (b, 0, t)),
        compiler_params=pltpu.CompilerParams(
            dimension_semantics=("parallel", "parallel")),
    )(windows, w_stack, b_col, masks)

    # Drop lane padding (no-op when l_pad == L) and pixel-shuffle to NCHW.
    # ReLU commutes with this pure permutation, so fusing it in the kernel
    # preserves exact semantics of relu(multi_conv(x)).
    out_cm = out_cm[:, :, :L]                                   # (B, 64, L)
    out = out_cm.reshape(B, OUT_CHANNELS, M, M, H, W)
    out = out.transpose(0, 1, 4, 2, 5, 3)                       # (B, OC, H, m, W, m)
    return out.reshape(B, OUT_CHANNELS, H * M, W * M)


def _reference_forward(x, weight, bias):
    """Pure-JAX reference matching the PyTorch module exactly."""
    B, C, H, W = x.shape
    xp = jnp.pad(x, ((0, 0), (0, 0), (1, 1), (1, 1)))
    slabs = []
    for c in range(C):
        for kh in range(KERNEL_SIZE):
            for kw in range(KERNEL_SIZE):
                slabs.append(xp[:, c, kh:kh + H, kw:kw + W])
    unfold = jnp.stack(slabs, axis=1).reshape(B, K_DIM, H * W)   # (B, 27, L)
    out = jnp.einsum("bkl,nk->bnl", unfold, weight,
                     precision=jax.lax.Precision.HIGHEST)
    out = jnp.maximum(out + bias[None, :, None], 0.0)            # (B, 64, L)
    out = out.reshape(B, OUT_CHANNELS, M, M, H, W)
    out = out.transpose(0, 1, 4, 2, 5, 3)
    return out.reshape(B, OUT_CHANNELS, H * M, W * M)


if __name__ == "__main__":
    key = jax.random.PRNGKey(0)
    kx, kw_, kb = jax.random.split(key, 3)

    B, H, W = 2, 16, 16
    x = jax.random.normal(kx, (B, IN_CHANNELS, H, W), dtype=jnp.float32)

    # Deterministic nn.Linear-style init: U(-1/sqrt(fan_in), 1/sqrt(fan_in)).
    bound = 1.0 / (K_DIM ** 0.5)
    weight = jax.random.uniform(kw_, (N_DIM, K_DIM), jnp.float32, -bound, bound)
    bias = jax.random.uniform(kb, (N_DIM,), jnp.float32, -bound, bound)

    out = jax.block_until_ready(example_model_forward(x, weight, bias))
    ref = _reference_forward(x, weight, bias)

    assert out.shape == (B, OUT_CHANNELS, H * M, W * M), out.shape
    err = float(jnp.max(jnp.abs(out - ref)))
    assert err < 1e-4, f"max abs error {err}"
    print("KERNEL_OK")
</pallas_src>

<mosaic_0001>
module attributes {stable_mosaic.version = 11 : i64} {
  func.func @_fused_conv_kernel(%arg0: i32, %arg1: i32, %arg2: memref<1x1x3x384xf32, #tpu.memory_space<vmem>>, %arg3: memref<9x64x3xf32, #tpu.memory_space<vmem>>, %arg4: memref<64x1xf32, #tpu.memory_space<vmem>>, %arg5: memref<2x256xf32, #tpu.memory_space<vmem>>, %arg6: memref<1x64x256xf32, #tpu.memory_space<vmem>>) attributes {dimension_semantics = [#tpu.dimension_semantics<parallel>, #tpu.dimension_semantics<parallel>], iteration_bounds = array<i64: 2, 1>, scalar_prefetch = 0 : i64, scratch_operands = 0 : i64, tpu.core_type = #tpu.core_type<tc>, window_params = [{transform_indices = @transform_0, window_bounds = array<i64: 1, 1, 3, 384>}, {pipeline_mode = #tpu.pipeline_mode<synchronous>, transform_indices = @transform_1, window_bounds = array<i64: 9, 64, 3>}, {pipeline_mode = #tpu.pipeline_mode<synchronous>, transform_indices = @transform_2, window_bounds = array<i64: 64, 1>}, {transform_indices = @transform_3, window_bounds = array<i64: 2, 256>}, {transform_indices = @transform_4, window_bounds = array<i64: 1, 64, 256>}]} {
    %c0 = arith.constant 0 : index
    %c0_0 = arith.constant 0 : index
    %c0_1 = arith.constant 0 : index
    %c0_2 = arith.constant 0 : index
    %0 = vector.load %arg2[%c0, %c0_0, %c0_1, %c0_2] : memref<1x1x3x384xf32, #tpu.memory_space<vmem>>, vector<1x1x3x384xf32>
    %1 = vector.shape_cast %0 : vector<1x1x3x384xf32> to vector<3x384xf32>
    %c0_3 = arith.constant 0 : index
    %c0_4 = arith.constant 0 : index
    %2 = vector.load %arg5[%c0_3, %c0_4] : memref<2x256xf32, #tpu.memory_space<vmem>>, vector<1x256xf32>
    %c1 = arith.constant 1 : index
    %c0_5 = arith.constant 0 : index
    %3 = vector.load %arg5[%c1, %c0_5] : memref<2x256xf32, #tpu.memory_space<vmem>>, vector<1x256xf32>
    %4 = vector.extract_strided_slice %1 {offsets = [0, 0], sizes = [3, 256], strides = [1, 1]} : vector<3x384xf32> to vector<3x256xf32>
    %5 = vector.broadcast %2 : vector<1x256xf32> to vector<3x256xf32>
    %6 = arith.mulf %4, %5 : vector<3x256xf32>
    %c0_6 = arith.constant 0 : index
    %c0_7 = arith.constant 0 : index
    %c0_8 = arith.constant 0 : index
    %7 = vector.load %arg3[%c0_6, %c0_7, %c0_8] : memref<9x64x3xf32, #tpu.memory_space<vmem>>, vector<1x64x3xf32>
    %8 = vector.shape_cast %7 : vector<1x64x3xf32> to vector<64x3xf32>
    %cst = arith.constant dense<0.000000e+00> : vector<64x256xf32>
    %9 = tpu.matmul %8, %6, %cst {dimension_numbers = #tpu.dot_dimension_numbers<[1], [0], [0], [1], [0, 0, 1, 1], [], []>} : vector<64x3xf32>, vector<3x256xf32>, vector<64x256xf32> -> vector<64x256xf32>
    %10 = vector.extract_strided_slice %1 {offsets = [0, 1], sizes = [3, 256], strides = [1, 1]} : vector<3x384xf32> to vector<3x256xf32>
    %c1_9 = arith.constant 1 : index
    %c0_10 = arith.constant 0 : index
    %c0_11 = arith.constant 0 : index
    %11 = vector.load %arg3[%c1_9, %c0_10, %c0_11] : memref<9x64x3xf32, #tpu.memory_space<vmem>>, vector<1x64x3xf32>
    %12 = vector.shape_cast %11 : vector<1x64x3xf32> to vector<64x3xf32>
    %cst_12 = arith.constant dense<0.000000e+00> : vector<64x256xf32>
    %13 = tpu.matmul %12, %10, %cst_12 {dimension_numbers = #tpu.dot_dimension_numbers<[1], [0], [0], [1], [0, 0, 1, 1], [], []>} : vector<64x3xf32>, vector<3x256xf32>, vector<64x256xf32> -> vector<64x256xf32>
    %14 = arith.addf %9, %13 : vector<64x256xf32>
    %15 = vector.extract_strided_slice %1 {offsets = [0, 2], sizes = [3, 256], strides = [1, 1]} : vector<3x384xf32> to vector<3x256xf32>
    %16 = vector.broadcast %3 : vector<1x256xf32> to vector<3x256xf32>
    %17 = arith.mulf %15, %16 : vector<3x256xf32>
    %c2 = arith.constant 2 : index
    %c0_13 = arith.constant 0 : index
    %c0_14 = arith.constant 0 : index
    %18 = vector.load %arg3[%c2, %c0_13, %c0_14] : memref<9x64x3xf32, #tpu.memory_space<vmem>>, vector<1x64x3xf32>
    %19 = vector.shape_cast %18 : vector<1x64x3xf32> to vector<64x3xf32>
    %cst_15 = arith.constant dense<0.000000e+00> : vector<64x256xf32>
    %20 = tpu.matmul %19, %17, %cst_15 {dimension_numbers = #tpu.dot_dimension_numbers<[1], [0], [0], [1], [0, 0, 1, 1], [], []>} : vector<64x3xf32>, vector<3x256xf32>, vector<64x256xf32> -> vector<64x256xf32>
    %21 = arith.addf %14, %20 : vector<64x256xf32>
    %22 = vector.extract_strided_slice %1 {offsets = [0, 16], sizes = [3, 256], strides = [1, 1]} : vector<3x384xf32> to vector<3x256xf32>
    %23 = vector.broadcast %2 : vector<1x256xf32> to vector<3x256xf32>
    %24 = arith.mulf %22, %23 : vector<3x256xf32>
    %c3 = arith.constant 3 : index
    %c0_16 = arith.constant 0 : index
    %c0_17 = arith.constant 0 : index
    %25 = vector.load %arg3[%c3, %c0_16, %c0_17] : memref<9x64x3xf32, #tpu.memory_space<vmem>>, vector<1x64x3xf32>
    %26 = vector.shape_cast %25 : vector<1x64x3xf32> to vector<64x3xf32>
    %cst_18 = arith.constant dense<0.000000e+00> : vector<64x256xf32>
    %27 = tpu.matmul %26, %24, %cst_18 {dimension_numbers = #tpu.dot_dimension_numbers<[1], [0], [0], [1], [0, 0, 1, 1], [], []>} : vector<64x3xf32>, vector<3x256xf32>, vector<64x256xf32> -> vector<64x256xf32>
    %28 = arith.addf %21, %27 : vector<64x256xf32>
    %29 = vector.extract_strided_slice %1 {offsets = [0, 17], sizes = [3, 256], strides = [1, 1]} : vector<3x384xf32> to vector<3x256xf32>
    %c4 = arith.constant 4 : index
    %c0_19 = arith.constant 0 : index
    %c0_20 = arith.constant 0 : index
    %30 = vector.load %arg3[%c4, %c0_19, %c0_20] : memref<9x64x3xf32, #tpu.memory_space<vmem>>, vector<1x64x3xf32>
    %31 = vector.shape_cast %30 : vector<1x64x3xf32> to vector<64x3xf32>
    %cst_21 = arith.constant dense<0.000000e+00> : vector<64x256xf32>
    %32 = tpu.matmul %31, %29, %cst_21 {dimension_numbers = #tpu.dot_dimension_numbers<[1], [0], [0], [1], [0, 0, 1, 1], [], []>} : vector<64x3xf32>, vector<3x256xf32>, vector<64x256xf32> -> vector<64x256xf32>
    %33 = arith.addf %28, %32 : vector<64x256xf32>
    %34 = vector.extract_strided_slice %1 {offsets = [0, 18], sizes = [3, 256], strides = [1, 1]} : vector<3x384xf32> to vector<3x256xf32>
    %35 = vector.broadcast %3 : vector<1x256xf32> to vector<3x256xf32>
    %36 = arith.mulf %34, %35 : vector<3x256xf32>
    %c5 = arith.constant 5 : index
    %c0_22 = arith.constant 0 : index
    %c0_23 = arith.constant 0 : index
    %37 = vector.load %arg3[%c5, %c0_22, %c0_23] : memref<9x64x3xf32, #tpu.memory_space<vmem>>, vector<1x64x3xf32>
    %38 = vector.shape_cast %37 : vector<1x64x3xf32> to vector<64x3xf32>
    %cst_24 = arith.constant dense<0.000000e+00> : vector<64x256xf32>
    %39 = tpu.matmul %38, %36, %cst_24 {dimension_numbers = #tpu.dot_dimension_numbers<[1], [0], [0], [1], [0, 0, 1, 1], [], []>} : vector<64x3xf32>, vector<3x256xf32>, vector<64x256xf32> -> vector<64x256xf32>
    %40 = arith.addf %33, %39 : vector<64x256xf32>
    %41 = vector.extract_strided_slice %1 {offsets = [0, 32], sizes = [3, 256], strides = [1, 1]} : vector<3x384xf32> to vector<3x256xf32>
    %42 = vector.broadcast %2 : vector<1x256xf32> to vector<3x256xf32>
    %43 = arith.mulf %41, %42 : vector<3x256xf32>
    %c6 = arith.constant 6 : index
    %c0_25 = arith.constant 0 : index
    %c0_26 = arith.constant 0 : index
    %44 = vector.load %arg3[%c6, %c0_25, %c0_26] : memref<9x64x3xf32, #tpu.memory_space<vmem>>, vector<1x64x3xf32>
    %45 = vector.shape_cast %44 : vector<1x64x3xf32> to vector<64x3xf32>
    %cst_27 = arith.constant dense<0.000000e+00> : vector<64x256xf32>
    %46 = tpu.matmul %45, %43, %cst_27 {dimension_numbers = #tpu.dot_dimension_numbers<[1], [0], [0], [1], [0, 0, 1, 1], [], []>} : vector<64x3xf32>, vector<3x256xf32>, vector<64x256xf32> -> vector<64x256xf32>
    %47 = arith.addf %40, %46 : vector<64x256xf32>
    %48 = vector.extract_strided_slice %1 {offsets = [0, 33], sizes = [3, 256], strides = [1, 1]} : vector<3x384xf32> to vector<3x256xf32>
    %c7 = arith.constant 7 : index
    %c0_28 = arith.constant 0 : index
    %c0_29 = arith.constant 0 : index
    %49 = vector.load %arg3[%c7, %c0_28, %c0_29] : memref<9x64x3xf32, #tpu.memory_space<vmem>>, vector<1x64x3xf32>
    %50 = vector.shape_cast %49 : vector<1x64x3xf32> to vector<64x3xf32>
    %cst_30 = arith.constant dense<0.000000e+00> : vector<64x256xf32>
    %51 = tpu.matmul %50, %48, %cst_30 {dimension_numbers = #tpu.dot_dimension_numbers<[1], [0], [0], [1], [0, 0, 1, 1], [], []>} : vector<64x3xf32>, vector<3x256xf32>, vector<64x256xf32> -> vector<64x256xf32>
    %52 = arith.addf %47, %51 : vector<64x256xf32>
    %53 = vector.extract_strided_slice %1 {offsets = [0, 34], sizes = [3, 256], strides = [1, 1]} : vector<3x384xf32> to vector<3x256xf32>
    %54 = vector.broadcast %3 : vector<1x256xf32> to vector<3x256xf32>
    %55 = arith.mulf %53, %54 : vector<3x256xf32>
    %c8 = arith.constant 8 : index
    %c0_31 = arith.constant 0 : index
    %c0_32 = arith.constant 0 : index
    %56 = vector.load %arg3[%c8, %c0_31, %c0_32] : memref<9x64x3xf32, #tpu.memory_space<vmem>>, vector<1x64x3xf32>
    %57 = vector.shape_cast %56 : vector<1x64x3xf32> to vector<64x3xf32>
    %cst_33 = arith.constant dense<0.000000e+00> : vector<64x256xf32>
    %58 = tpu.matmul %57, %55, %cst_33 {dimension_numbers = #tpu.dot_dimension_numbers<[1], [0], [0], [1], [0, 0, 1, 1], [], []>} : vector<64x3xf32>, vector<3x256xf32>, vector<64x256xf32> -> vector<64x256xf32>
    %59 = arith.addf %52, %58 : vector<64x256xf32>
    %c0_34 = arith.constant 0 : index
    %c0_35 = arith.constant 0 : index
    %60 = vector.load %arg4[%c0_34, %c0_35] : memref<64x1xf32, #tpu.memory_space<vmem>>, vector<64x1xf32>
    %61 = vector.broadcast %60 : vector<64x1xf32> to vector<64x256xf32>
    %62 = arith.addf %59, %61 : vector<64x256xf32>
    %cst_36 = arith.constant 0.000000e+00 : f32
    %63 = vector.broadcast %cst_36 : f32 to vector<64x256xf32>
    %64 = arith.maximumf %62, %63 : vector<64x256xf32>
    %c0_37 = arith.constant 0 : index
    %c0_38 = arith.constant 0 : index
    %c0_39 = arith.constant 0 : index
    %65 = vector.load %arg6[%c0_37, %c0_38, %c0_39] : memref<1x64x256xf32, #tpu.memory_space<vmem>>, vector<1x64x256xf32>
    %66 = vector.shape_cast %65 : vector<1x64x256xf32> to vector<64x256xf32>
    %67 = vector.shape_cast %64 : vector<64x256xf32> to vector<1x64x256xf32>
    tpu.vector_store %arg6[%c0_37, %c0_38, %c0_39], %67 {strides = array<i32>} : memref<1x64x256xf32, #tpu.memory_space<vmem>>, vector<1x64x256xf32>,
    return
  }
  func.func @transform_0(%arg0: i32, %arg1: i32) -> (i32, i32, i32, i32) {
    %c0_i32 = arith.constant 0 : i32
    %c0_i32_0 = arith.constant 0 : i32
    %c0_i32_1 = arith.constant 0 : i32
    return %arg0, %arg1, %c0_i32, %c0_i32_0 : i32, i32, i32, i32
  }
  func.func @transform_1(%arg0: i32, %arg1: i32) -> (i32, i32, i32) {
    %c0_i32 = arith.constant 0 : i32
    %c0_i32_0 = arith.constant 0 : i32
    %c0_i32_1 = arith.constant 0 : i32
    %c0_i32_2 = arith.constant 0 : i32
    return %c0_i32, %c0_i32_0, %c0_i32_1 : i32, i32, i32
  }
  func.func @transform_2(%arg0: i32, %arg1: i32) -> (i32, i32) {
    %c0_i32 = arith.constant 0 : i32
    %c0_i32_0 = arith.constant 0 : i32
    %c0_i32_1 = arith.constant 0 : i32
    return %c0_i32, %c0_i32_0 : i32, i32
  }
  func.func @transform_3(%arg0: i32, %arg1: i32) -> (i32, i32) {
    %c0_i32 = arith.constant 0 : i32
    %c0_i32_0 = arith.constant 0 : i32
    return %c0_i32, %arg1 : i32, i32
  }
  func.func @transform_4(%arg0: i32, %arg1: i32) -> (i32, i32, i32) {
    %c0_i32 = arith.constant 0 : i32
    %c0_i32_0 = arith.constant 0 : i32
    return %arg0, %c0_i32, %arg1 : i32, i32, i32
  }
}

</mosaic_0001>

<bundles_post_ra>
// kernel: example_model_forward.1
= control target key start
LH: loop header
LB: loop body
LE: loop exit
PB: predicated region body
PF: predicated region fallthrough
CT: control target
= control target key end

     0   :  { %s2489_s15 = smov 0   ;;  %s2491_s16 = smov 0   ;;  %s3008_s0 = inlined_call_operand.vmem [shape: f32[2,1,3,384], index: 0, kind: input, shape index: {}]   ;;  %s3009_s1 = inlined_call_operand.vmem [shape: f32[9,64,3], index: 1, kind: input, shape index: {}]   ;;  %s3010_s2 = inlined_call_operand.vmem [shape: f32[64,1], index: 2, kind: input, shape index: {}]   ;;  %s3011_s3 = inlined_call_operand.vmem [shape: f32[2,256], index: 3, kind: input, shape index: {}]   ;;  %s3012_s4 = inlined_call_operand.vmem [shape: f32[2,64,256], index: 4, kind: output, shape index: {}]  }
   0x1   :  { %s2493_s17 = smov 0  }
   0x2 LB: > { %s26_s18 = sadd.s32 1, %s2443_s16  ;;  %p2090_p0 = scmp.ge.s32.totalorder %s2447_s17, 1  ;;  %s2447_s17 = sphi %s2493_s17, %s14_s17   ;;  %s2443_s16 = sphi %s2491_s16, %s3014_s16   ;;  %s2439_s15 = sphi %s2489_s15, %s3013_s15  }
   0x3   : > { %p28_p1 = scmp.ge.s32.totalorder %s26_s18, 2  ;;  %p193_p2 = scmp.lt.s32.totalorder %s2447_s17, 3 }
   0x5   : > { %s3016_s18 = smov (%p28_p1, %s26_s18), 0  ;;  %p194_p3 = pnand %p2090_p0, %p193_p2 }
   0x6   : > { %v263_v0 = vlaneseq (!%p194_p3)  ;;  %p232_p4 = scmp.lt.s32.totalorder (!%p194_p3), %s2439_s15, 1  ;;  %v2094_v1 = vld [vmem:[%s3011_s3 + $0x1] ss:$2 sm:$0x3] (!%p194_p3)  ;;  %s2449_s27 = smov (!%p194_p3), 18   ;;  %v2454_v15 = vmov (!%p194_p3), 0.0  }
   0x7   : > { %197 = sbr.rel (%p194_p3) target bundleno = 646 (0x286), region = 36  ;;  %v259_v3 = vld [vmem:[%s3011_s3] ss:$2 sm:$0x3] (!%p194_p3)  ;;  %s2450_s28 = smov (!%p194_p3), 2   ;;  %1083 = vmatprep.mubr.f32.mxu0 (!%p194_p3), %v2454_v15  ;;  %397 = vmatprep.mubr.f32.mxu1 (!%p194_p3), %v2454_v15  ;;  %vm1151_vm0 = vcmask (!%p194_p3), 146432  }
   0x8   : > { %v264_v2 = vshrl.u32 (!%p194_p3), %v263_v0, 7  ;;  %s2451_s29 = smov (!%p194_p3), 32   ;;  %s2452_s30 = smov (!%p194_p3), 127   ;;  %vm1338_vm1 = vcmask (!%p194_p3), 261120   ;;  %vm300_vm2 = vcmask (!%p194_p3), 1039360   ;;  %vm328_vm3 = vcmask (!%p194_p3), 1042432  }
   0x9   : > { %s2453_s5 = smov (!%p194_p3), 111   ;;  %s2455_s6 = smov (!%p194_p3), 110   ;;  %vm602_vm4 = vcmask (!%p194_p3), 15360   ;;  %vm988_vm5 = vcmask (!%p194_p3), 908288   ;;  %vm303_vm6 = vcmask (!%p194_p3), 23552   ;;  %v2095_v38 = vld [vmem:[%s3009_s1 + $0x40] sm:$0xff] (!%p194_p3) }
   0xa   : > { %v265_v4 = vsub.s32 (!%p194_p3), 0, %v264_v2  ;;  %v269_v5 = vsub.s32 (!%p194_p3), 1, %v264_v2  ;;  %s2456_s7 = smov (!%p194_p3), 16   ;;  %s2457_s8 = smov (!%p194_p3), 96   ;;  %v2159_v42 = vld [vmem:[%s3009_s1 + $0x100] sm:$0xff] (!%p194_p3)  ;;  %v2096_v43 = vld [vmem:[%s3009_s1 + $0x48] sm:$0xff] (!%p194_p3) }
   0xb   : > { %s2458_s11 = smov (!%p194_p3), 34   ;;  %v2160_v48 = vld [vmem:[%s3009_s1 + $0x108] sm:$0xff] (!%p194_p3)  ;;  %v2097_v49 = vld [vmem:[%s3009_s1 + $0x50] sm:$0xff] (!%p194_p3)  ;;  %s2459_s24 = smov (!%p194_p3), 126   ;;  %v2098_v52 = vld [vmem:[%s3009_s1 + $0x58] sm:$0xff] (!%p194_p3)  ;;  %vm1175_vm7 = vcmask (!%p194_p3), 900096  }
   0xc   : > { %v593_v6 = vrot.slane (!%p194_p3), %v2094_v1, %v265_v4  ;;  %v597_v7 = vrot.slane (!%p194_p3), %v2094_v1, %v269_v5  ;;  %v266_v8 = vrot.slane (!%p194_p3), %v259_v3, %v265_v4  ;;  %v270_v9 = vrot.slane (!%p194_p3), %v259_v3, %v269_v5  ;;  %v2161_v51 = vld [vmem:[%s3009_s1 + $0x110] sm:$0xff] (!%p194_p3)  ;;  %v2162_v53 = vld [vmem:[%s3009_s1 + $0x118] sm:$0xff] (!%p194_p3)  ;;  %v2099_v54 = vld [vmem:[%s3009_s1 + $0x60] sm:$0xff] (!%p194_p3)  ;;  %s2461_s10 = smov (!%p194_p3), 112   ;;  %s2462_s19 = smov (!%p194_p3), 94  }
   0xd   : > { %v2100_v55 = vld [vmem:[%s3009_s1 + $0x68] sm:$0xff] (!%p194_p3)  ;;  %v2101_v56 = vld [vmem:[%s3009_s1 + $0x70] sm:$0xff] (!%p194_p3)  ;;  %v2102_v57 = vld [vmem:[%s3009_s1 + $0x78] sm:$0xff] (!%p194_p3)  ;;  %vm789_vm8 = vcmask (!%p194_p3), 130048   ;;  %vm1700_vm9 = vcmask (!%p194_p3), 277504   ;;  %vm1362_vm10 = vcmask (!%p194_p3), 785408  }
   0xe   : > { %s3018_s15 = smov (!%p232_p4, %s2439_s15), 1  ;;  %v2519_v10 = vcombine.low %v593_v6, %v597_v7  ;;  %v2524_v12 = vcombine.low %v266_v8, %v270_v9  ;;  %v274_v58 = vld [vmem:[%s3009_s1] sm:$0xff]  ;;  %v275_v59 = vld [vmem:[%s3009_s1 + $0x8] sm:$0xff]  ;;  %v276_v60 = vld [vmem:[%s3009_s1 + $0x10] sm:$0xff]  ;;  %vm626_vm11 = vcmask 1031168   ;;  %vm1537_vm12 = vcmask 777216  }
   0xf   : > { %s2382_s23 = smul.u32 12, %s3018_s15  ;;  %v277_v61 = vld [vmem:[%s3009_s1 + $0x18] sm:$0xff]  ;;  %v278_v62 = vld [vmem:[%s3009_s1 + $0x20] sm:$0xff]  ;;  %v279_v63 = vld [vmem:[%s3009_s1 + $0x28] sm:$0xff]  ;;  %vm813_vm13 = vcmask 916480   ;;  %vm1724_vm14 = vcmask 769024  }
  0x10   : > { %1148 = vrot.lane.b32.xlu0 %v2519_v10, %s2449_s27  ;;  %599 = vrot.lane.b32.xlu1 %v2519_v10, %s2450_s28  ;;  %v280_v0 = vld [vmem:[%s3009_s1 + $0x30] sm:$0xff]  ;;  %v281_v1 = vld [vmem:[%s3009_s1 + $0x38] sm:$0xff] }
  0x11   : > { %s240_s26 = scalar_lea.vmem %s3008_s0, %s2382_s23 }
  0x12   : > { %v2521_v11 = vld [vmem:[%s240_s26] sm:$0x77]  ;;  %v2533_v14 = vld [vmem:[%s240_s26 + $0x8] sm:$0x7] }
  0x13   : > { %v2529_v13 = vcombine.high %v2521_v11, %v2521_v11  ;;  %v273_v46 = vmul.f32 %v2524_v12, %v2521_v11 }
  0x14   : > { %1335 = vrot.lane.b32.xlu0 %v2524_v12, %s2451_s29  ;;  %s2460_s29 = smov 95  }
  0x15   : > { %296 = vrot.lane.b32.xlu1 %v2529_v13, %s2452_s30  ;;  %v447_v50 = vcombine.high %v273_v46, %v273_v46 }
  0x18   : > { %298 = vrot.lane.b32.xlu0 %v2533_v14, %s2452_s30 }
  0x19   : > { %984 = vrot.lane.b32.xlu1 %v2529_v13, %s2453_s5 }
  0x1c   : > { %986 = vrot.lane.b32.xlu0 %v2533_v14, %s2453_s5 }
  0x1d   : > { %294 = vrot.lane.b32.xlu1 %v2521_v11, %s2452_s30 }
  0x20   : > { %982 = vrot.lane.b32.xlu0 %v2521_v11, %s2453_s5 }
  0x82   : > { %v1149_v16 = vpop.permute.xlu0 %1148  ;;  %v600_v17 = vpop.permute.xlu1 %599 }
  0x83   : > { %v1150_v18 = vrot.slane %v1149_v16, 4  ;;  %v601_v30 = vrot.slane %v600_v17, 4 }
  0x85   : > { %v1152_v19 = vsel %vm1151_vm0, %v1150_v18, %v1149_v16  ;;  %v1156_v20 = vmul.f32 %v1150_v18, %v2533_v14  ;;  %v603_v35 = vsel %vm602_vm4, %v601_v30, %v600_v17  ;;  %v607_v44 = vmul.f32 %v601_v30, %v2533_v14 }
  0x86   : > { %v1155_v21 = vmul.f32 %v1152_v19, %v2521_v11  ;;  %v1336_v22 = vpop.permute.xlu0 %1335  ;;  %v606_v40 = vmul.f32 %v603_v35, %v2521_v11  ;;  %v2178_v19 = vld [vmem:[%s3009_s1 + $0x148] sm:$0xff] }
  0x87   : > { %v297_v23 = vpop.permute.xlu1 %296  ;;  %1173 = vrot.lane.b32.xlu0 %v1156_v20, %s2455_s6  ;;  %v1337_v24 = vrot.slane %v1336_v22, 4 }
  0x88   : > { %v1168_v25 = vcombine.high %v1155_v21, %v1155_v21  ;;  %v619_v47 = vcombine.high %v606_v40, %v606_v40 }
  0x89   : > { %v1339_v26 = vsel %vm1338_vm1, %v1337_v24, %v1336_v22  ;;  %v1343_v39 = vmul.f32 %v1337_v24, %v2533_v14  ;;  %v2179_v24 = vld [vmem:[%s3009_s1 + $0x150] sm:$0xff] }
  0x8a   : > { %1171 = vrot.lane.b32.xlu1 %v1168_v25, %s2455_s6  ;;  %v1342_v27 = vmul.f32 %v1339_v26, %v2521_v11  ;;  %v299_v28 = vpop.permute.xlu0 %298 }
  0x8b   : > { %v985_v29 = vpop.permute.xlu1 %984  ;;  %786 = vrot.lane.b32.xlu0 %v2524_v12, %s2456_s7  ;;  %v302_v31 = vsel %vm300_vm2, %v297_v23, %v299_v28 }
  0x8c   : > { %v1355_v32 = vcombine.high %v1342_v27, %v1342_v27  ;;  %2103 = vmatprep.subr.msk.mxu1 %vm328_vm3, %v302_v31 }
  0x8e   : > { %1169 = vrot.lane.b32.xlu1 %v1155_v21, %s2455_s6  ;;  %v987_v33 = vpop.permute.xlu0 %986 }
  0x8f   : > { %v295_v34 = vpop.permute.xlu1 %294  ;;  %1358 = vrot.lane.b32.xlu0 %v1355_v32, %s2457_s8  ;;  %v2549_v36 = vsel %vm988_vm5, %v985_v29, %v987_v33  ;;  %v2181_v32 = vld [vmem:[%s3009_s1 + $0x160] sm:$0xff] }
  0x90   : > { %v301_v37 = vsel %vm300_vm2, %v295_v34, %v297_v23  ;;  %2167 = vmatprep.subr.msk.mxu0 %vm328_vm3, %v2549_v36  ;;  %v2123_v34 = vld [vmem:[%s3009_s1 + $0x80] sm:$0xff] }
  0x91   : > { %2104 = vmatpush1.msk.msra.mxu1 %vm328_vm3, %v301_v37  ;;  %v2182_v37 = vld [vmem:[%s3009_s1 + $0x168] sm:$0xff] }
  0x92   : > { %2105 = vmatmul.mubr.msk.f32.vlgmr.msra.gmra.mrb[0].mxu1 %vm303_vm6, %v2095_v38  ;;  %1697 = vrot.lane.b32.xlu1 %v2519_v10, %s2458_s11  ;;  %v983_v41 = vpop.permute.xlu0 %982  ;;  %v2177_v10 = vld [vmem:[%s3009_s1 + $0x140] sm:$0xff] }
  0x93   : > { %403 = vmatprep.mubr.f32.mxu1 %v2454_v15  ;;  %1356 = vrot.lane.b32.xlu0 %v1342_v27, %s2457_s8  ;;  %v2571_v45 = vsel %vm988_vm5, %v983_v41, %v985_v29 }
  0x94   : > { %2168 = vmatpush1.msk.msra.mxu0 %vm328_vm3, %v2571_v45  ;;  %2113 = vmatprep.subr.msk.mxu1 %vm328_vm3, %v447_v50 }
  0x95   : > { %2169 = vmatmul.mubr.msk.f32.vlgmr.msra.gmra.mrb[0].mxu0 %vm303_vm6, %v2159_v42  ;;  %2114 = vmatpush1.msk.msra.mxu1 %vm328_vm3, %v273_v46  ;;  %v2183_v42 = vld [vmem:[%s3009_s1 + $0x170] sm:$0xff]  ;;  %v2126_v46 = vld [vmem:[%s3009_s1 + $0x98] sm:$0xff] }
  0x96   : > { %2106 = vmatmul.mubr.msk.f32.gmra.mrb[2].mxu1 %vm303_vm6, %v2096_v43  ;;  %1360 = vrot.lane.b32.xlu1 %v1343_v39, %s2457_s8  ;;  %v2125_v43 = vld [vmem:[%s3009_s1 + $0x90] sm:$0xff] }
  0x97   : > { %1089 = vmatprep.mubr.f32.mxu0 %v2454_v15  ;;  %624 = vrot.lane.b32.xlu0 %v607_v44, %s2459_s24  ;;  %v2184_v44 = vld [vmem:[%s3009_s1 + $0x178] sm:$0xff] }
  0x98   : > { %409 = vmatprep.mubr.f32.mxu1 %v2454_v15 }
  0x99   : > { %2170 = vmatmul.mubr.msk.f32.gmra.mrb[2].mxu0 %vm303_vm6, %v2160_v48  ;;  %v2195_v48 = vld [vmem:[%s3009_s1 + $0x180] sm:$0xff] }
  0x9a   : > { %2107 = vmatmul.mubr.msk.f32.gmra.mrb[4].mxu1 %vm303_vm6, %v2097_v49  ;;  %622 = vrot.lane.b32.xlu1 %v619_v47, %s2459_s24  ;;  %v2127_v49 = vld [vmem:[%s3009_s1 + $0xa0] sm:$0xff] }
  0x9b   : > { %1095 = vmatprep.mubr.f32.mxu0 %v2454_v15  ;;  %1533 = vrot.lane.b32.xlu0 %v2529_v13, %s2460_s29 }
  0x9c   : > { %415 = vmatprep.mubr.f32.mxu1 %v2454_v15 }
  0x9d   : > { %2171 = vmatmul.mubr.msk.f32.gmra.mrb[4].mxu0 %vm303_vm6, %v2161_v51  ;;  %v2196_v51 = vld [vmem:[%s3009_s1 + $0x188] sm:$0xff] }
  0x9e   : > { %2108 = vmatmul.mubr.msk.f32.gmra.mrb[6].mxu1 %vm303_vm6, %v2098_v52  ;;  %620 = vrot.lane.b32.xlu1 %v606_v40, %s2459_s24  ;;  %v2124_v40 = vld [vmem:[%s3009_s1 + $0x88] sm:$0xff]  ;;  %s2251_s24 = sshll.u32 %s3018_s15, 7 }
  0x9f   : > { %1101 = vmatprep.mubr.f32.mxu0 %v2454_v15  ;;  %1531 = vrot.lane.b32.xlu0 %v2521_v11, %s2460_s29  ;;  %v2128_v52 = vld [vmem:[%s3009_s1 + $0xa8] sm:$0xff]  ;;  %s2981_s27 = scalar_lea.vmem %s3012_s4, %s2251_s24 }
  0xa0   : > { %421 = vmatprep.mubr.f32.mxu1 %v2454_v15 }
  0xa1   : > { %2172 = vmatmul.mubr.msk.f32.gmra.mrb[6].mxu0 %vm303_vm6, %v2162_v53  ;;  %v2197_v53 = vld [vmem:[%s3009_s1 + $0x190] sm:$0xff] }
  0xa2   : > { %2109 = vmatmul.mubr.msk.f32.gmra.mrb[8].mxu1 %vm303_vm6, %v2099_v54  ;;  %1535 = vrot.lane.b32.xlu1 %v2533_v14, %s2460_s29  ;;  %v2129_v54 = vld [vmem:[%s3009_s1 + $0xb0] sm:$0xff] }
  0xa3   : > { %1270 = vmatprep.mubr.f32.mxu0 %v2454_v15  ;;  %427 = vmatprep.mubr.f32.mxu1 %v2454_v15 }
  0xa6   : > { %2110 = vmatmul.mubr.msk.f32.gmra.mrb[10].mxu1 %vm303_vm6, %v2100_v55  ;;  %v1884_v55 = vld [vmem:[%s3010_s2] sm:$0xff] }
  0xa7   : > { %433 = vmatprep.mubr.f32.mxu1 %v2454_v15 }
  0xaa   : > { %2111 = vmatmul.mubr.msk.f32.gmra.mrb[12].mxu1 %vm303_vm6, %v2101_v56  ;;  %v1885_v56 = vld [vmem:[%s3010_s2 + $0x8] sm:$0xff] }
  0xab   : > { %439 = vmatprep.mubr.f32.mxu1 %v2454_v15 }
  0xae   : > { %2112 = vmatmul.mubr.msk.f32.gmra.mrb[14].mxu1 %vm303_vm6, %v2102_v57  ;;  %v2198_v57 = vld [vmem:[%s3009_s1 + $0x198] sm:$0xff] }
  0xaf   : > { %540 = vmatprep.mubr.f32.mxu1 %v2454_v15 }
  0xb2   : > { %2115 = vmatmul.mubr.msk.f32.vlgmr.msra.gmra.mrb[0].mxu1 %vm303_vm6, %v274_v58  ;;  %v2130_v58 = vld [vmem:[%s3009_s1 + $0xb8] sm:$0xff] }
  0xb3   : > { %546 = vmatprep.mubr.f32.mxu1 %v2454_v15 }
  0xb6   : > { %2116 = vmatmul.mubr.msk.f32.gmra.mrb[2].mxu1 %vm303_vm6, %v275_v59  ;;  %v2463_v59 = vmov 0  }
  0xb7   : > { %552 = vmatprep.mubr.f32.mxu1 %v2454_v15  ;;  %2422 = vset.pattern.permute.xlu1 %v2463_v59 }
  0xb8   : > { %2423 = vset.pattern.permute.xlu0 %v2463_v59 }
  0xba   : > { %2117 = vmatmul.mubr.msk.f32.gmra.mrb[4].mxu1 %vm303_vm6, %v276_v60  ;;  %v1886_v60 = vld [vmem:[%s3010_s2 + $0x10] sm:$0xff] }
  0xbb   : > { %558 = vmatprep.mubr.f32.mxu1 %v2454_v15 }
  0xbe   : > { %2118 = vmatmul.mubr.msk.f32.gmra.mrb[6].mxu1 %vm303_vm6, %v277_v61  ;;  %v1888_v61 = vld [vmem:[%s3010_s2 + $0x20] sm:$0xff] }
  0xbf   : > { %564 = vmatprep.mubr.f32.mxu1 %v2454_v15 }
  0xc2   : > { %2119 = vmatmul.mubr.msk.f32.gmra.mrb[8].mxu1 %vm303_vm6, %v278_v62  ;;  %v2199_v62 = vld [vmem:[%s3009_s1 + $0x1a0] sm:$0xff] }
  0xc3   : > { %570 = vmatprep.mubr.f32.mxu1 %v2454_v15 }
  0xc6   : > { %2120 = vmatmul.mubr.msk.f32.gmra.mrb[10].mxu1 %vm303_vm6, %v279_v63  ;;  %v1887_v63 = vld [vmem:[%s3010_s2 + $0x18] sm:$0xff] }
  0xc7   : > { %576 = vmatprep.mubr.f32.mxu1 %v2454_v15 }
  0xca   : > { %2121 = vmatmul.mubr.msk.f32.gmra.mrb[12].mxu1 %vm303_vm6, %v280_v0  ;;  %v1890_v0 = vld [vmem:[%s3010_s2 + $0x30] sm:$0xff] }
  0xcb   : > { %582 = vmatprep.mubr.f32.mxu1 %v2454_v15 }
  0xce   : > { %2122 = vmatmul.mubr.msk.f32.gmra.mrb[14].mxu1 %vm303_vm6, %v281_v1  ;;  %v2200_v1 = vld [vmem:[%s3009_s1 + $0x1a8] sm:$0xff] }
  0xcf   : > { %721 = vmatprep.mubr.f32.mxu1 %v2454_v15 }
  0xf9   : > { %v1174_v2 = vpop.permute.xlu0 %1173 }
  0xfc   : > { %v1172_v3 = vpop.permute.xlu1 %1171 }
  0xfd   : > { %v1177_v4 = vsel %vm1175_vm7, %v1172_v3, %v1174_v2  ;;  %v787_v5 = vpop.permute.xlu0 %786  ;;  %v1889_v2 = vld [vmem:[%s3010_s2 + $0x28] sm:$0xff] }
  0xfe   : > { %v788_v6 = vrot.slane %v787_v5, 4  ;;  %2185 = vmatprep.subr.msk.mxu0 %vm328_vm3, %v1177_v4  ;;  %v1891_v4 = vld [vmem:[%s3010_s2 + $0x38] sm:$0xff] }
 0x100   : > { %v790_v7 = vsel %vm789_vm8, %v788_v6, %v787_v5  ;;  %v794_v8 = vmul.f32 %v788_v6, %v2533_v14  ;;  %v1170_v9 = vpop.permute.xlu1 %1169  ;;  %v2202_v5 = vld [vmem:[%s3009_s1 + $0x1b8] sm:$0xff]  ;;  %v2213_v6 = vld [vmem:[%s3009_s1 + $0x1c0] sm:$0xff] }
 0x101   : > { %v793_v12 = vmul.f32 %v790_v7, %v2521_v11  ;;  %v1176_v13 = vsel %vm1175_vm7, %v1170_v9, %v1172_v3  ;;  %v1359_v16 = vpop.permute.xlu0 %1358  ;;  %v2201_v3 = vld [vmem:[%s3009_s1 + $0x1b0] sm:$0xff]  ;;  %v2214_v7 = vld [vmem:[%s3009_s1 + $0x1c8] sm:$0xff]  ;;  %v2216_v9 = vld [vmem:[%s3009_s1 + $0x1d8] sm:$0xff] }
 0x102   : > { %811 = vrot.lane.b32.xlu0 %v794_v8, %s2461_s10  ;;  %2186 = vmatpush1.msk.msra.mxu0 %vm328_vm3, %v1176_v13  ;;  %v2215_v8 = vld [vmem:[%s3009_s1 + $0x1d0] sm:$0xff] }
 0x103   : > { %v806_v17 = vcombine.high %v793_v12, %v793_v12  ;;  %2187 = vmatmul.mubr.msk.f32.vlgmr.msra.gmra.mrb[0].mxu0 %vm303_vm6, %v2177_v10  ;;  %v2217_v10 = vld [vmem:[%s3009_s1 + $0x1e0] sm:$0xff]  ;;  %v2219_v13 = vld [vmem:[%s3009_s1 + $0x1f0] sm:$0xff] }
 0x104   : > { %v1698_v18 = vpop.permute.xlu1 %1697  ;;  %1276 = vmatprep.mubr.f32.mxu0 %v2454_v15 }
 0x105   : > { %v1699_v20 = vrot.slane %v1698_v18, 4  ;;  %809 = vrot.lane.b32.xlu1 %v806_v17, %s2461_s10  ;;  %v1357_v21 = vpop.permute.xlu0 %1356 }
 0x106   : > { %v1363_v29 = vsel %vm1362_vm10, %v1357_v21, %v1359_v16  ;;  %v2141_v21 = vld [vmem:[%s3009_s1 + $0xc0] sm:$0xff] }
 0x107   : > { %v1701_v22 = vsel %vm1700_vm9, %v1699_v20, %v1698_v18  ;;  %2188 = vmatmul.mubr.msk.f32.gmra.mrb[2].mxu0 %vm303_vm6, %v2178_v19  ;;  %v1705_v26 = vmul.f32 %v1699_v20, %v2533_v14 }
 0x108   : > { %v1704_v23 = vmul.f32 %v1701_v22, %v2521_v11  ;;  %1282 = vmatprep.mubr.f32.mxu0 %v2454_v15  ;;  %v1361_v25 = vpop.permute.xlu1 %1360  ;;  %v2180_v11 = vld [vmem:[%s3009_s1 + $0x158] sm:$0xff] }
 0x109   : > { %807 = vrot.lane.b32.xlu1 %v793_v12, %s2461_s10  ;;  %v1364_v27 = vsel %vm1362_vm10, %v1359_v16, %v1361_v25  ;;  %v625_v30 = vpop.permute.xlu0 %624  ;;  %v2218_v12 = vld [vmem:[%s3009_s1 + $0x1e8] sm:$0xff]  ;;  %v2220_v16 = vld [vmem:[%s3009_s1 + $0x1f8] sm:$0xff] }
 0x10a   : > { %v1717_v28 = vcombine.high %v1704_v23, %v1704_v23  ;;  %2203 = vmatprep.subr.msk.mxu0 %vm328_vm3, %v1364_v27  ;;  %v2142_v25 = vld [vmem:[%s3009_s1 + $0xc8] sm:$0xff] }
 0x10b   : > { %2189 = vmatmul.mubr.msk.f32.gmra.mrb[4].mxu0 %vm303_vm6, %v2179_v24 }
 0x10c   : > { %1720 = vrot.lane.b32.xlu0 %v1717_v28, %s2462_s19  ;;  %1288 = vmatprep.mubr.f32.mxu0 %v2454_v15  ;;  %v623_v31 = vpop.permute.xlu1 %622 }
 0x10d   : > { %1722 = vrot.lane.b32.xlu1 %v1705_v26, %s2462_s19  ;;  %2204 = vmatpush1.msk.msra.mxu0 %vm328_vm3, %v1363_v29  ;;  %v628_v14 = vsel %vm626_vm11, %v623_v31, %v625_v30  ;;  %v1534_v38 = vpop.permute.xlu0 %1533  ;;  %v2232_v29 = vld [vmem:[%s3009_s1 + $0x208] sm:$0xff]  ;;  %v2144_v30 = vld [vmem:[%s3009_s1 + $0xd8] sm:$0xff] }
 0x10e   : > { %2131 = vmatprep.subr.msk.mxu1 %vm328_vm3, %v628_v14  ;;  %v2234_v14 = vld [vmem:[%s3009_s1 + $0x218] sm:$0xff] }
 0x10f   : > { %2190 = vmatmul.mubr.msk.f32.gmra.mrb[6].mxu0 %vm303_vm6, %v2180_v11  ;;  %v2233_v11 = vld [vmem:[%s3009_s1 + $0x210] sm:$0xff] }
 0x110   : > { %1718 = vrot.lane.b32.xlu0 %v1704_v23, %s2462_s19  ;;  %1294 = vmatprep.mubr.f32.mxu0 %v2454_v15  ;;  %v621_v33 = vpop.permute.xlu1 %620 }
 0x111   : > { %v627_v35 = vsel %vm626_vm11, %v621_v33, %v623_v31  ;;  %v1532_v47 = vpop.permute.xlu0 %1531  ;;  %1894 = vperm.xlu1 %2422, %v1884_v55   ;;  %v2145_v31 = vld [vmem:[%s3009_s1 + $0xe0] sm:$0xff] }
 0x112   : > { %2132 = vmatpush1.msk.msra.mxu1 %vm328_vm3, %v627_v35  ;;  %v1538_v50 = vsel %vm1537_vm12, %v1532_v47, %v1534_v38  ;;  %v2235_v33 = vld [vmem:[%s3009_s1 + $0x220] sm:$0xff]  ;;  %v2236_v35 = vld [vmem:[%s3009_s1 + $0x228] sm:$0xff] }
 0x113   : > { %2191 = vmatmul.mubr.msk.f32.gmra.mrb[8].mxu0 %vm303_vm6, %v2181_v32  ;;  %2133 = vmatmul.mubr.msk.f32.vlgmr.msra.gmra.mrb[0].mxu1 %vm303_vm6, %v2123_v34  ;;  %v2146_v32 = vld [vmem:[%s3009_s1 + $0xe8] sm:$0xff]  ;;  %v2147_v34 = vld [vmem:[%s3009_s1 + $0xf0] sm:$0xff] }
 0x114   : > { %1300 = vmatprep.mubr.f32.mxu0 %v2454_v15  ;;  %v1536_v39 = vpop.permute.xlu1 %1535  ;;  %727 = vmatprep.mubr.f32.mxu1 %v2454_v15 }
 0x115   : > { %v1539_v41 = vsel %vm1537_vm12, %v1534_v38, %v1536_v39  ;;  %1899 = vperm.xlu0 %2423, %v1885_v56   ;;  %1904 = vperm.xlu1 %2422, %v1886_v60   ;;  %v2237_v38 = vld [vmem:[%s3009_s1 + $0x230] sm:$0xff]  ;;  %v2163_v39 = vld [vmem:[%s3009_s1 + $0x120] sm:$0xff] }
 0x116   : > { %2221 = vmatprep.subr.msk.mxu0 %vm328_vm3, %v1539_v41  ;;  %v2164_v41 = vld [vmem:[%s3009_s1 + $0x128] sm:$0xff] }
 0x117   : > { %2192 = vmatmul.mubr.msk.f32.gmra.mrb[10].mxu0 %vm303_vm6, %v2182_v37  ;;  %2134 = vmatmul.mubr.msk.f32.gmra.mrb[2].mxu1 %vm303_vm6, %v2124_v40  ;;  %v2148_v37 = vld [vmem:[%s3009_s1 + $0xf8] sm:$0xff] }
 0x118   : > { %1306 = vmatprep.mubr.f32.mxu0 %v2454_v15  ;;  %733 = vmatprep.mubr.f32.mxu1 %v2454_v15  ;;  %v2238_v40 = vld [vmem:[%s3009_s1 + $0x238] sm:$0xff] }
 0x119   : > { %1914 = vperm.xlu0 %2423, %v1888_v61   ;;  %1909 = vperm.xlu1 %2422, %v1887_v63  }
 0x11b   : > { %2193 = vmatmul.mubr.msk.f32.gmra.mrb[12].mxu0 %vm303_vm6, %v2183_v42  ;;  %2135 = vmatmul.mubr.msk.f32.gmra.mrb[4].mxu1 %vm303_vm6, %v2125_v43  ;;  %v2165_v42 = vld [vmem:[%s3009_s1 + $0x130] sm:$0xff]  ;;  %v2166_v43 = vld [vmem:[%s3009_s1 + $0x138] sm:$0xff] }
 0x11c   : > { %1312 = vmatprep.mubr.f32.mxu0 %v2454_v15  ;;  %739 = vmatprep.mubr.f32.mxu1 %v2454_v15 }
 0x11d   : > { %1924 = vperm.xlu0 %2423, %v1890_v0   ;;  %1919 = vperm.xlu1 %2422, %v1889_v2  }
 0x11f   : > { %2194 = vmatmul.mubr.msk.f32.gmra.mrb[14].mxu0 %vm303_vm6, %v2184_v44  ;;  %2136 = vmatmul.mubr.msk.f32.gmra.mrb[6].mxu1 %vm303_vm6, %v2126_v46 }
 0x120   : > { %1457 = vmatprep.mubr.f32.mxu0 %v2454_v15  ;;  %745 = vmatprep.mubr.f32.mxu1 %v2454_v15 }
 0x121   : > { %1929 = vperm.xlu1 %2422, %v1891_v4  }
 0x123   : > { %2205 = vmatmul.mubr.msk.f32.vlgmr.msra.gmra.mrb[0].mxu0 %vm303_vm6, %v2195_v48  ;;  %2137 = vmatmul.mubr.msk.f32.gmra.mrb[8].mxu1 %vm303_vm6, %v2127_v49 }
 0x124   : > { %1463 = vmatprep.mubr.f32.mxu0 %v2454_v15  ;;  %2222 = vmatpush1.msk.msra.mxu0 %vm328_vm3, %v1538_v50 }
 0x125   : > { %751 = vmatprep.mubr.f32.mxu1 %v2454_v15 }
 0x127   : > { %2206 = vmatmul.mubr.msk.f32.gmra.mrb[2].mxu0 %vm303_vm6, %v2196_v51  ;;  %2138 = vmatmul.mubr.msk.f32.gmra.mrb[10].mxu1 %vm303_vm6, %v2128_v52 }
 0x128   : > { %1469 = vmatprep.mubr.f32.mxu0 %v2454_v15  ;;  %757 = vmatprep.mubr.f32.mxu1 %v2454_v15 }
 0x12b   : > { %2207 = vmatmul.mubr.msk.f32.gmra.mrb[4].mxu0 %vm303_vm6, %v2197_v53  ;;  %2139 = vmatmul.mubr.msk.f32.gmra.mrb[12].mxu1 %vm303_vm6, %v2129_v54 }
 0x12c   : > { %1475 = vmatprep.mubr.f32.mxu0 %v2454_v15  ;;  %763 = vmatprep.mubr.f32.mxu1 %v2454_v15 }
 0x12f   : > { %2208 = vmatmul.mubr.msk.f32.gmra.mrb[6].mxu0 %vm303_vm6, %v2198_v57  ;;  %2140 = vmatmul.mubr.msk.f32.gmra.mrb[14].mxu1 %vm303_vm6, %v2130_v58 }
 0x130   : > { %1481 = vmatprep.mubr.f32.mxu0 %v2454_v15  ;;  %908 = vmatprep.mubr.f32.mxu1 %v2454_v15 }
 0x133   : > { %2209 = vmatmul.mubr.msk.f32.gmra.mrb[8].mxu0 %vm303_vm6, %v2199_v62 }
 0x134   : > { %1487 = vmatprep.mubr.f32.mxu0 %v2454_v15 }
 0x137   : > { %2210 = vmatmul.mubr.msk.f32.gmra.mrb[10].mxu0 %vm303_vm6, %v2200_v1 }
 0x138   : > { %1493 = vmatprep.mubr.f32.mxu0 %v2454_v15 }
 0x13b   : > { %2211 = vmatmul.mubr.msk.f32.gmra.mrb[12].mxu0 %vm303_vm6, %v2201_v3 }
 0x13c   : > { %1499 = vmatprep.mubr.f32.mxu0 %v2454_v15 }
 0x13f   : > { %2212 = vmatmul.mubr.msk.f32.gmra.mrb[14].mxu0 %vm303_vm6, %v2202_v5 }
 0x140   : > { %1632 = vmatprep.mubr.f32.mxu0 %v2454_v15 }
 0x143   : > { %2223 = vmatmul.mubr.msk.f32.vlgmr.msra.gmra.mrb[0].mxu0 %vm303_vm6, %v2213_v6 }
 0x144   : > { %1638 = vmatprep.mubr.f32.mxu0 %v2454_v15 }
 0x147   : > { %2224 = vmatmul.mubr.msk.f32.gmra.mrb[2].mxu0 %vm303_vm6, %v2214_v7 }
 0x148   : > { %1644 = vmatprep.mubr.f32.mxu0 %v2454_v15 }
 0x14b   : > { %2225 = vmatmul.mubr.msk.f32.gmra.mrb[4].mxu0 %vm303_vm6, %v2215_v8 }
 0x14c   : > { %1650 = vmatprep.mubr.f32.mxu0 %v2454_v15 }
 0x14f   : > { %2226 = vmatmul.mubr.msk.f32.gmra.mrb[6].mxu0 %vm303_vm6, %v2216_v9 }
 0x150   : > { %1656 = vmatprep.mubr.f32.mxu0 %v2454_v15 }
 0x153   : > { %2227 = vmatmul.mubr.msk.f32.gmra.mrb[8].mxu0 %vm303_vm6, %v2217_v10 }
 0x154   : > { %1662 = vmatprep.mubr.f32.mxu0 %v2454_v15 }
 0x157   : > { %2228 = vmatmul.mubr.msk.f32.gmra.mrb[10].mxu0 %vm303_vm6, %v2218_v12 }
 0x158   : > { %1668 = vmatprep.mubr.f32.mxu0 %v2454_v15 }
 0x15b   : > { %2229 = vmatmul.mubr.msk.f32.gmra.mrb[12].mxu0 %vm303_vm6, %v2219_v13 }
 0x15c   : > { %1674 = vmatprep.mubr.f32.mxu0 %v2454_v15 }
 0x15f   : > { %2230 = vmatmul.mubr.msk.f32.gmra.mrb[14].mxu0 %vm303_vm6, %v2220_v16 }
 0x160   : > { %1819 = vmatprep.mubr.f32.mxu0 %v2454_v15 }
 0x174   : > { %v812_v17 = vpop.permute.xlu0 %811 }
 0x177   : > { %v810_v18 = vpop.permute.xlu1 %809 }
 0x178   : > { %v815_v19 = vsel %vm813_vm13, %v810_v18, %v812_v17 }
 0x179   : > { %2149 = vmatprep.subr.msk.mxu1 %vm328_vm3, %v815_v19 }
 0x17b   : > { %v808_v20 = vpop.permute.xlu1 %807 }
 0x17c   : > { %v814_v22 = vsel %vm813_vm13, %v808_v20, %v810_v18 }
 0x17d   : > { %2150 = vmatpush1.msk.msra.mxu1 %vm328_vm3, %v814_v22 }
 0x17e   : > { %v1721_v23 = vpop.permute.xlu0 %1720  ;;  %2151 = vmatmul.mubr.msk.f32.vlgmr.msra.gmra.mrb[0].mxu1 %vm303_vm6, %v2141_v21  ;;  %2252 = vmatprep.subr.msk.mxu1 %vm328_vm3, %v2549_v36  ;;  %v2231_v36 = vld [vmem:[%s3009_s1 + $0x200] sm:$0xff] }
 0x17f   : > { %2253 = vmatpush1.msk.msra.mxu1 %vm328_vm3, %v2571_v45  ;;  %v1723_v24 = vpop.permute.xlu1 %1722  ;;  %914 = vmatprep.mubr.f32.mxu1 %v2454_v15  ;;  %v2143_v45 = vld [vmem:[%s3009_s1 + $0xd0] sm:$0xff] }
 0x180   : > { %v1726_v26 = vsel %vm1724_vm14, %v1721_v23, %v1723_v24 }
 0x181   : > { %2239 = vmatprep.subr.msk.mxu0 %vm328_vm3, %v1726_v26 }
 0x182   : > { %v1719_v27 = vpop.permute.xlu0 %1718  ;;  %2152 = vmatmul.mubr.msk.f32.gmra.mrb[2].mxu1 %vm303_vm6, %v2142_v25 }
 0x183   : > { %v1725_v28 = vsel %vm1724_vm14, %v1719_v27, %v1721_v23  ;;  %920 = vmatprep.mubr.f32.mxu1 %v2454_v15 }
 0x184   : > { %2240 = vmatpush1.msk.msra.mxu0 %vm328_vm3, %v1725_v28 }
 0x185   : > { %2241 = vmatmul.mubr.msk.f32.vlgmr.msra.gmra.mrb[0].mxu0 %vm303_vm6, %v2231_v36 }
 0x186   : > { %2153 = vmatmul.mubr.msk.f32.gmra.mrb[4].mxu1 %vm303_vm6, %v2143_v45  ;;  %1825 = vmatprep.mubr.f32.mxu0 %v2454_v15 }
 0x187   : > { %926 = vmatprep.mubr.f32.mxu1 %v2454_v15 }
 0x189   : > { %2242 = vmatmul.mubr.msk.f32.gmra.mrb[2].mxu0 %vm303_vm6, %v2232_v29 }
 0x18a   : > { %2154 = vmatmul.mubr.msk.f32.gmra.mrb[6].mxu1 %vm303_vm6, %v2144_v30  ;;  %1831 = vmatprep.mubr.f32.mxu0 %v2454_v15 }
 0x18b   : > { %932 = vmatprep.mubr.f32.mxu1 %v2454_v15 }
 0x18d   : > { %2243 = vmatmul.mubr.msk.f32.gmra.mrb[4].mxu0 %vm303_vm6, %v2233_v11 }
 0x18e   : > { %2155 = vmatmul.mubr.msk.f32.gmra.mrb[8].mxu1 %vm303_vm6, %v2145_v31  ;;  %1837 = vmatprep.mubr.f32.mxu0 %v2454_v15 }
 0x18f   : > { %938 = vmatprep.mubr.f32.mxu1 %v2454_v15 }
 0x190   : > { %v1895_v50 = vpop.permute.xlu1 %1894 }
 0x191   : > { %2244 = vmatmul.mubr.msk.f32.gmra.mrb[6].mxu0 %vm303_vm6, %v2234_v14 }
 0x192   : > { %2156 = vmatmul.mubr.msk.f32.gmra.mrb[10].mxu1 %vm303_vm6, %v2146_v32  ;;  %1843 = vmatprep.mubr.f32.mxu0 %v2454_v15 }
 0x193   : > { %944 = vmatprep.mubr.f32.mxu1 %v2454_v15 }
 0x194   : > { %v1900_v58 = vpop.permute.xlu0 %1899  ;;  %v1905_v2 = vpop.permute.xlu1 %1904 }
 0x195   : > { %2245 = vmatmul.mubr.msk.f32.gmra.mrb[8].mxu0 %vm303_vm6, %v2235_v33 }
 0x196   : > { %2157 = vmatmul.mubr.msk.f32.gmra.mrb[12].mxu1 %vm303_vm6, %v2147_v34  ;;  %1849 = vmatprep.mubr.f32.mxu0 %v2454_v15 }
 0x197   : > { %950 = vmatprep.mubr.f32.mxu1 %v2454_v15 }
 0x198   : > { %v1910_v17 = vpop.permute.xlu1 %1909  ;;  %v1915_v30 = vpop.permute.xlu0 %1914 }
 0x199   : > { %2246 = vmatmul.mubr.msk.f32.gmra.mrb[10].mxu0 %vm303_vm6, %v2236_v35 }
 0x19a   : > { %2158 = vmatmul.mubr.msk.f32.gmra.mrb[14].mxu1 %vm303_vm6, %v2148_v37  ;;  %1855 = vmatprep.mubr.f32.mxu0 %v2454_v15 }
 0x19b   : > { %1107 = vmatprep.mubr.f32.mxu1 %v2454_v15 }
 0x19d   : > { %2247 = vmatmul.mubr.msk.f32.gmra.mrb[12].mxu0 %vm303_vm6, %v2237_v38 }
 0x19e   : > { %2173 = vmatmul.mubr.msk.f32.vlgmr.msra.gmra.mrb[8].mxu1 %vm303_vm6, %v2163_v39  ;;  %1861 = vmatprep.mubr.f32.mxu0 %v2454_v15 }
 0x19f   : > { %1113 = vmatprep.mubr.f32.mxu1 %v2454_v15 }
 0x1a1   : > { %2248 = vmatmul.mubr.msk.f32.gmra.mrb[14].mxu0 %vm303_vm6, %v2238_v40 }
 0x1a2   : > { %2174 = vmatmul.mubr.msk.f32.gmra.mrb[10].mxu1 %vm303_vm6, %v2164_v41 }
 0x1a3   : > { %1119 = vmatprep.mubr.f32.mxu1 %v2454_v15 }
 0x1a6   : > { %2175 = vmatmul.mubr.msk.f32.gmra.mrb[12].mxu1 %vm303_vm6, %v2165_v42 }
 0x1a7   : > { %1125 = vmatprep.mubr.f32.mxu1 %v2454_v15 }
 0x1aa   : > { %2176 = vmatmul.mubr.msk.f32.gmra.mrb[14].mxu1 %vm303_vm6, %v2166_v43 }
 0x251   : > { %v910_v44 = vpop.f32.mrb[0].mxu1 }
 0x252   : > { %v912_v46 = vpop.f32.mrb[1].mxu1 }
 0x255   : > { %v916_v47 = vpop.f32.mrb[2].mxu1 }
 0x256   : > { %v918_v48 = vpop.f32.mrb[3].mxu1 }
 0x258   : > { %v1821_v49 = vpop.f32.mrb[0].mxu0 }
 0x259   : > { %v2254_v51 = vadd.f32 %v1821_v49, %v910_v44  ;;  %v922_v52 = vpop.f32.mrb[4].mxu1  ;;  %v1823_v53 = vpop.f32.mrb[1].mxu0 }
 0x25a   : > { %v2255_v54 = vadd.f32 %v1823_v53, %v912_v46  ;;  %v924_v55 = vpop.f32.mrb[5].mxu1  ;;  %v1920_v46 = vpop.permute.xlu1 %1919 }
 0x25b   : > { %v1932_v56 = vadd.f32 %v2254_v51, %v1895_v50 }
 0x25c   : > { %v1933_v15 = vadd.f32 %v2255_v54, %v1895_v50  ;;  %v1827_v57 = vpop.f32.mrb[2].mxu0 }
 0x25d   : > { %v1948_v59 = vmax.f32 %v1932_v56, 0.0  ;;  %v2256_v60 = vadd.f32 %v1827_v57, %v916_v47  ;;  %v928_v61 = vpop.f32.mrb[6].mxu1  ;;  %v1829_v62 = vpop.f32.mrb[3].mxu0 }
 0x25e   : > { %v1949_v63 = vmax.f32 %v1933_v15, 0.0  ;;  %v2257_v0 = vadd.f32 %v1829_v62, %v918_v48  ;;  %v930_v1 = vpop.f32.mrb[7].mxu1 }
 0x25f   : > { %1964 = vst [vmem:[%s2981_s27] sm:$0xff] %v1948_v59  ;;  %v1934_v3 = vadd.f32 %v2256_v60, %v1900_v58 }
 0x260   : > { %1965 = vst [vmem:[%s2981_s27 + $0x8] sm:$0xff] %v1949_v63  ;;  %v1935_v4 = vadd.f32 %v2257_v0, %v1900_v58  ;;  %v1833_v5 = vpop.f32.mrb[4].mxu0  ;;  %v1930_v63 = vpop.permute.xlu1 %1929 }
 0x261   : > { %v1950_v6 = vmax.f32 %v1934_v3, 0.0  ;;  %v2258_v7 = vadd.f32 %v1833_v5, %v922_v52  ;;  %v1835_v8 = vpop.f32.mrb[5].mxu0 }
 0x262   : > { %v1951_v9 = vmax.f32 %v1935_v4, 0.0  ;;  %v2259_v10 = vadd.f32 %v1835_v8, %v924_v55  ;;  %v1925_v55 = vpop.permute.xlu0 %1924 }
 0x263   : > { %1966 = vst [vmem:[%s2981_s27 + $0x10] sm:$0xff] %v1950_v6  ;;  %v1936_v12 = vadd.f32 %v2258_v7, %v1905_v2 }
 0x264   : > { %1967 = vst [vmem:[%s2981_s27 + $0x18] sm:$0xff] %v1951_v9  ;;  %v1937_v13 = vadd.f32 %v2259_v10, %v1905_v2  ;;  %v1839_v16 = vpop.f32.mrb[6].mxu0 }
 0x265   : > { %v1952_v18 = vmax.f32 %v1936_v12, 0.0  ;;  %v2260_v19 = vadd.f32 %v1839_v16, %v928_v61  ;;  %v1841_v20 = vpop.f32.mrb[7].mxu0 }
 0x266   : > { %v1953_v21 = vmax.f32 %v1937_v13, 0.0  ;;  %v2261_v22 = vadd.f32 %v1841_v20, %v930_v1 }
 0x267   : > { %1968 = vst [vmem:[%s2981_s27 + $0x20] sm:$0xff] %v1952_v18  ;;  %v1938_v23 = vadd.f32 %v2260_v19, %v1910_v17 }
 0x268   : > { %1969 = vst [vmem:[%s2981_s27 + $0x28] sm:$0xff] %v1953_v21  ;;  %v1939_v24 = vadd.f32 %v2261_v22, %v1910_v17  ;;  %v1845_v25 = vpop.f32.mrb[8].mxu0 }
 0x269   : > { %v1954_v26 = vmax.f32 %v1938_v23, 0.0  ;;  %v1847_v27 = vpop.f32.mrb[9].mxu0 }
 0x26a   : > { %v1955_v36 = vmax.f32 %v1939_v24, 0.0 }
 0x26b   : > { %1970 = vst [vmem:[%s2981_s27 + $0x30] sm:$0xff] %v1954_v26 }
 0x26c   : > { %1971 = vst [vmem:[%s2981_s27 + $0x38] sm:$0xff] %v1955_v36  ;;  %v1851_v28 = vpop.f32.mrb[10].mxu0 }
 0x26d   : > { %v1853_v45 = vpop.f32.mrb[11].mxu0 }
 0x270   : > { %v1857_v29 = vpop.f32.mrb[12].mxu0 }
 0x271   : > { %v1109_v11 = vpop.f32.mrb[8].mxu1  ;;  %v1859_v31 = vpop.f32.mrb[13].mxu0 }
 0x272   : > { %v2262_v14 = vadd.f32 %v1845_v25, %v1109_v11  ;;  %v1111_v32 = vpop.f32.mrb[9].mxu1 }
 0x273   : > { %v2263_v33 = vadd.f32 %v1847_v27, %v1111_v32 }
 0x274   : > { %v1940_v34 = vadd.f32 %v2262_v14, %v1915_v30  ;;  %v1863_v35 = vpop.f32.mrb[14].mxu0 }
 0x275   : > { %v1941_v37 = vadd.f32 %v2263_v33, %v1915_v30  ;;  %v1115_v38 = vpop.f32.mrb[10].mxu1  ;;  %v1865_v39 = vpop.f32.mrb[15].mxu0 }
 0x276   : > { %v1956_v40 = vmax.f32 %v1940_v34, 0.0  ;;  %v2264_v41 = vadd.f32 %v1851_v28, %v1115_v38  ;;  %v1117_v42 = vpop.f32.mrb[11].mxu1 }
 0x277   : > { %v1957_v43 = vmax.f32 %v1941_v37, 0.0  ;;  %v2265_v44 = vadd.f32 %v1853_v45, %v1117_v42 }
 0x278   : > { %1972 = vst [vmem:[%s2981_s27 + $0x40] sm:$0xff] %v1956_v40  ;;  %v1942_v47 = vadd.f32 %v2264_v41, %v1920_v46 }
 0x279   : > { %1973 = vst [vmem:[%s2981_s27 + $0x48] sm:$0xff] %v1957_v43  ;;  %v1943_v48 = vadd.f32 %v2265_v44, %v1920_v46  ;;  %v1121_v49 = vpop.f32.mrb[12].mxu1 }
 0x27a   : > { %v1958_v50 = vmax.f32 %v1942_v47, 0.0  ;;  %v2266_v51 = vadd.f32 %v1857_v29, %v1121_v49  ;;  %v1123_v52 = vpop.f32.mrb[13].mxu1 }
 0x27b   : > { %v1959_v53 = vmax.f32 %v1943_v48, 0.0  ;;  %v2267_v54 = vadd.f32 %v1859_v31, %v1123_v52 }
 0x27c   : > { %1974 = vst [vmem:[%s2981_s27 + $0x50] sm:$0xff] %v1958_v50  ;;  %v1944_v56 = vadd.f32 %v2266_v51, %v1925_v55 }
 0x27d   : > { %1975 = vst [vmem:[%s2981_s27 + $0x58] sm:$0xff] %v1959_v53  ;;  %v1945_v15 = vadd.f32 %v2267_v54, %v1925_v55  ;;  %v1127_v57 = vpop.f32.mrb[14].mxu1 }
 0x27e   : > { %v1960_v58 = vmax.f32 %v1944_v56, 0.0  ;;  %v2268_v59 = vadd.f32 %v1863_v35, %v1127_v57  ;;  %v1129_v60 = vpop.f32.mrb[15].mxu1 }
 0x27f   : > { %v1961_v61 = vmax.f32 %v1945_v15, 0.0  ;;  %v2269_v62 = vadd.f32 %v1865_v39, %v1129_v60 }
 0x280   : > { %1976 = vst [vmem:[%s2981_s27 + $0x60] sm:$0xff] %v1960_v58  ;;  %v1946_v0 = vadd.f32 %v2268_v59, %v1930_v63 }
 0x281   : > { %1977 = vst [vmem:[%s2981_s27 + $0x68] sm:$0xff] %v1961_v61  ;;  %v1947_v1 = vadd.f32 %v2269_v62, %v1930_v63 }
 0x282   : > { %v1962_v2 = vmax.f32 %v1946_v0, 0.0 }
 0x283   : > { %v1963_v3 = vmax.f32 %v1947_v1, 0.0 }
 0x284   : > { %1978 = vst [vmem:[%s2981_s27 + $0x70] sm:$0xff] %v1962_v2 }
 0x285   : > { %1979 = vst [vmem:[%s2981_s27 + $0x78] sm:$0xff] %v1963_v3 }
 0x286 PF: > { %s14_s17 = sadd.s32 1, %s2447_s17   ;;  %s3013_s15 = smov %s2443_s16 }
 0x287   : > { %p11_p5 = scmp.ge.s32.totalorder %s14_s17, 4   ;;  %s3014_s16 = smov %s3016_s18 }
 0x289   :  { %13 = sbr.rel (!%p11_p5) target bundleno = 2 (0x2), region = 78 }

</bundles_post_ra>
